<compile_context>
chip_gen: v7x
topology: tpu7x:2x2x1
jax: 0.10.0
libtpu: 0.0.40
codegen_flags: <defaults>
</compile_context>

<pallas_src>
import functools

import jax
import jax.numpy as jnp
from jax.experimental import pallas as pl
from jax.experimental.pallas import tpu as pltpu


def _round_up(x, m):
    return ((x + m - 1) // m) * m


# ---------------------------------------------------------------------------
# Kernels
# ---------------------------------------------------------------------------

def mlp_kernel(x_ref, w1_ref, b1_ref, w2_ref, b2_ref, o_ref, *, act_dtype):
    """Fused silu(x @ w1 + b1) @ w2 + b2 for one row tile; weights resident."""
    h = jnp.dot(x_ref[...].astype(jnp.bfloat16), w1_ref[...],
                preferred_element_type=jnp.float32)
    h = (h + b1_ref[...]).astype(act_dtype)          # f32 bias add -> act dtype
    h = h * jax.nn.sigmoid(h)                        # SiLU: EUP sigmoid, VPU mul
    y = jnp.dot(h.astype(jnp.bfloat16), w2_ref[...],
                preferred_element_type=jnp.float32)
    o_ref[...] = (y + b2_ref[...]).astype(o_ref.dtype)


def mlp_kernel_ktiled(x_ref, w1_ref, b1_ref, w2_ref, b2_ref, o_ref, acc_ref,
                      *, act_dtype):
    """Same MLP with hdim tiled along an 'arbitrary' grid axis.

    Used when the full bf16 weights don't fit in VMEM: W1 columns / W2 rows
    are streamed while an f32 accumulator holds the partial output tile.
    SiLU is applied per hidden unit, so hdim tiling is exact.
    """
    k = pl.program_id(1)

    @pl.when(k == 0)
    def _():
        acc_ref[...] = jnp.zeros_like(acc_ref)

    h = jnp.dot(x_ref[...].astype(jnp.bfloat16), w1_ref[...],
                preferred_element_type=jnp.float32)
    h = (h + b1_ref[...]).astype(act_dtype)
    h = h * jax.nn.sigmoid(h)
    acc_ref[...] += jnp.dot(h.astype(jnp.bfloat16), w2_ref[...],
                            preferred_element_type=jnp.float32)

    @pl.when(k == pl.num_programs(1) - 1)
    def _():
        o_ref[...] = (acc_ref[...] + b2_ref[...]).astype(o_ref.dtype)


# ---------------------------------------------------------------------------
# Chip heuristics & VMEM fitting
# ---------------------------------------------------------------------------

def _chip_defaults():
    """(row tile default, row tile floor, vmem_limit_bytes, act dtype, #TCs)."""
    try:
        kind = jax.devices()[0].device_kind.lower()
    except Exception:
        kind = ""
    MiB = 1024 * 1024
    if "v7" in kind:
        # 64 MiB physical VMEM, 2x256^2 MXU, 2 TensorCores per chip.
        return 512, 256, 56 * MiB, jnp.bfloat16, 2
    if "v6" in kind:
        return 512, 256, 96 * MiB, jnp.bfloat16, 1
    if "v5" in kind:
        # Most HBM-bound chip; no bf16 VPU/EUP -> keep activation math in f32.
        return 512, 128, 96 * MiB, jnp.float32, 1
    return 256, 128, None, jnp.float32, 1


def _simple_vmem_need(tm, idim_p, hdim_p, odim_p, x_bytes, out_bytes, act_bytes,
                      weight_buffers):
    """Rough VMEM bytes for the resident-weight kernel at row tile `tm`."""
    resident = weight_buffers * (2 * (idim_p * hdim_p + hdim_p * odim_p)
                                 + 4 * (hdim_p + odim_p))
    tiles = 2 * tm * idim_p * x_bytes + 2 * tm * odim_p * out_bytes
    interm = tm * hdim_p * (4 + act_bytes) + tm * odim_p * 4
    return resident + tiles + interm


def _ktiled_vmem_need(tm, th, idim_p, odim_p, x_bytes, out_bytes, act_bytes):
    """Rough VMEM bytes for the hdim-tiled kernel at tiles (tm, th)."""
    w_tiles = 2 * (idim_p * th + th * odim_p) * 2 + 2 * th * 4 + 2 * odim_p * 4
    tiles = 2 * tm * idim_p * x_bytes + 2 * tm * odim_p * out_bytes
    acc = tm * odim_p * 4
    interm = tm * th * (4 + act_bytes) + tm * odim_p * 4
    return w_tiles + tiles + acc + interm


# ---------------------------------------------------------------------------
# Parameter preparation (hoisted out of the per-call path)
# ---------------------------------------------------------------------------

def prepare_mlp_params(w1, b1, w2, b2):
    """Pad all lane dims to multiples of 128 and cast weights to bf16 ONCE.

    w1: (idim, hdim), b1: (hdim,), w2: (hdim, odim), b2: (odim,)
    Zero padding is exact: padded x columns hit zero W1 rows, padded hidden
    units give silu(0)=0 against zero W2 rows, padded output columns are
    sliced off in the wrapper.
    """
    idim, hdim = w1.shape
    odim = w2.shape[1]
    idim_p, hdim_p, odim_p = (_round_up(d, 128) for d in (idim, hdim, odim))
    w1_p = jnp.pad(w1, ((0, idim_p - idim), (0, hdim_p - hdim))).astype(jnp.bfloat16)
    w2_p = jnp.pad(w2, ((0, hdim_p - hdim), (0, odim_p - odim))).astype(jnp.bfloat16)
    b1_p = jnp.pad(b1, (0, hdim_p - hdim)).astype(jnp.float32).reshape(1, hdim_p)
    b2_p = jnp.pad(b2, (0, odim_p - odim)).astype(jnp.float32).reshape(1, odim_p)
    return dict(w1=w1_p, b1=b1_p, w2=w2_p, b2=b2_p,
                idim=idim, hdim=hdim, odim=odim)


# ---------------------------------------------------------------------------
# Forward wrapper
# ---------------------------------------------------------------------------

def mlp_pallas(x, params, *, out_dtype=None, tm=None):
    """Fused MLP forward: silu(x @ w1 + b1) @ w2 + b2 (channel-last, norm='none').

    x:       (..., idim), any leading dims (e.g. (batch, seq, idim)).
    params:  output of prepare_mlp_params (padded + bf16-cast once, not per call).
    out_dtype: pass jnp.bfloat16 to halve the output HBM write when acceptable;
               defaults to x.dtype.
    Note: matmuls run in bf16 on the MXU with f32 accumulation (intentional
    precision trade vs the f32 PyTorch reference).
    """
    *lead, idim = x.shape
    assert idim == params["idim"], "input feature dim mismatch"
    odim = params["odim"]
    w1_p, b1_p, w2_p, b2_p = params["w1"], params["b1"], params["w2"], params["b2"]
    idim_p, hdim_p = w1_p.shape
    odim_p = w2_p.shape[1]

    N = 1
    for d in lead:
        N *= d
    x_flat = x.reshape(N, idim)

    out_dtype = out_dtype or x.dtype
    out_bytes = jnp.dtype(out_dtype).itemsize
    x_bytes = max(jnp.dtype(x.dtype).itemsize, 2)   # worst case for the fit

    tm_default, tm_min, vmem_limit, act_dtype, num_tc = _chip_defaults()
    act_bytes = jnp.dtype(act_dtype).itemsize
    budget = vmem_limit if vmem_limit is not None else 32 * 1024 * 1024
    if tm is None:
        tm = tm_default

    def _cparams(sem):
        kw = dict(dimension_semantics=sem)
        if vmem_limit is not None:
            kw["vmem_limit_bytes"] = vmem_limit
        return pltpu.CompilerParams(**kw)

    def fit_tm(tm_start, weight_buffers):
        t = tm_start
        while t > tm_min and (_simple_vmem_need(
                t, idim_p, hdim_p, odim_p, x_bytes, out_bytes, act_bytes,
                weight_buffers) > 0.9 * budget):
            t //= 2
        return t

    def finalize_tm(t):
        # On 2-TC chips make sure the row grid has >= num_tc steps so the
        # "parallel" axis actually engages both TensorCores.
        if num_tc >= 2 and N > tm_min:
            t = min(t, max(tm_min, _round_up(-(-N // num_tc), tm_min)))
        t = min(t, _round_up(N, 8))          # don't over-tile tiny inputs
        return max(t, 8)

    def prep_x(tm_):
        N_p = _round_up(N, tm_)
        if idim == idim_p and N_p == N:
            # Aligned: no wrapper copy; cast to bf16 per-tile inside the kernel.
            return x_flat, N_p
        # Ragged: pad (and fold the bf16 cast into the same copy).
        x_in = jnp.pad(x_flat, ((0, N_p - N), (0, idim_p - idim)))
        return x_in.astype(jnp.bfloat16), N_p

    def run_simple(tm_, weight_mode):
        tm_ = finalize_tm(tm_)
        x_in, N_p = prep_x(tm_)
        cost = pl.CostEstimate(
            flops=2 * N_p * (idim_p * hdim_p + hdim_p * odim_p),
            transcendentals=N_p * hdim_p,
            bytes_accessed=(N_p * idim_p * x_in.dtype.itemsize
                            + 2 * (idim_p * hdim_p + hdim_p * odim_p)
                            + 4 * (hdim_p + odim_p)
                            + N_p * odim_p * out_bytes),
        )

        def wspec(shape):
            if weight_mode is None:
                return pl.BlockSpec(shape, lambda i: (0, 0))
            return pl.BlockSpec(shape, lambda i: (0, 0), pipeline_mode=weight_mode)

        out = pl.pallas_call(
            functools.partial(mlp_kernel, act_dtype=act_dtype),
            out_shape=jax.ShapeDtypeStruct((N_p, odim_p), out_dtype),
            grid_spec=pltpu.PrefetchScalarGridSpec(
                num_scalar_prefetch=0,
                grid=(N_p // tm_,),
                in_specs=[
                    pl.BlockSpec((tm_, idim_p), lambda i: (i, 0)),
                    wspec((idim_p, hdim_p)),
                    wspec((1, hdim_p)),
                    wspec((hdim_p, odim_p)),
                    wspec((1, odim_p)),
                ],
                out_specs=pl.BlockSpec((tm_, odim_p), lambda i: (i, 0)),
            ),
            compiler_params=_cparams(("parallel",)),
            cost_estimate=cost,
        )(x_in, w1_p, b1_p, w2_p, b2_p)
        return out[:N, :odim]

    def run_ktiled():
        # Keep full-MXU-height row tiles; cut VMEM by tiling hdim instead.
        tm_ = finalize_tm(max(tm, tm_min))
        x_in, N_p = prep_x(tm_)
        # Largest hdim tile (multiple of 128 dividing hdim_p) that fits.
        m = hdim_p // 128
        th = 128
        for d in range(m, 0, -1):
            if m % d == 0:
                cand = 128 * d
                if _ktiled_vmem_need(tm_, cand, idim_p, odim_p, x_bytes,
                                     out_bytes, act_bytes) <= 0.9 * budget:
                    th = cand
                    break
        n_row = N_p // tm_
        cost = pl.CostEstimate(
            flops=2 * N_p * (idim_p * hdim_p + hdim_p * odim_p),
            transcendentals=N_p * hdim_p,
            bytes_accessed=(N_p * idim_p * x_in.dtype.itemsize
                            + n_row * 2 * (idim_p * hdim_p + hdim_p * odim_p)
                            + n_row * 4 * (hdim_p + odim_p)
                            + N_p * odim_p * out_bytes),
        )
        out = pl.pallas_call(
            functools.partial(mlp_kernel_ktiled, act_dtype=act_dtype),
            out_shape=jax.ShapeDtypeStruct((N_p, odim_p), out_dtype),
            grid_spec=pltpu.PrefetchScalarGridSpec(
                num_scalar_prefetch=0,
                grid=(n_row, hdim_p // th),
                in_specs=[
                    pl.BlockSpec((tm_, idim_p), lambda i, k: (i, 0)),
                    pl.BlockSpec((idim_p, th), lambda i, k: (0, k)),
                    pl.BlockSpec((1, th), lambda i, k: (0, k)),
                    pl.BlockSpec((th, odim_p), lambda i, k: (k, 0)),
                    pl.BlockSpec((1, odim_p), lambda i, k: (0, 0)),
                ],
                out_specs=pl.BlockSpec((tm_, odim_p), lambda i, k: (i, 0)),
                scratch_shapes=[pltpu.VMEM((tm_, odim_p), jnp.float32)],
            ),
            compiler_params=_cparams(("parallel", "arbitrary")),
            cost_estimate=cost,
        )(x_in, w1_p, b1_p, w2_p, b2_p)
        return out[:N, :odim]

    tm_floor = finalize_tm(tm_min)
    weights_fit = (_simple_vmem_need(tm_floor, idim_p, hdim_p, odim_p, x_bytes,
                                     out_bytes, act_bytes, 1) <= 0.9 * budget)

    if weights_fit:
        try:
            # Weights/biases are grid-invariant: one VMEM buffer is enough.
            out2d = run_simple(fit_tm(tm, 1), pl.Buffered(1))
        except Exception:
            # Buffered(1) rejected: re-fit with DOUBLE-buffered weights so the
            # fallback stays within the VMEM budget (or tile hdim if it can't).
            tm2 = fit_tm(tm, 2)
            if (_simple_vmem_need(finalize_tm(tm2), idim_p, hdim_p, odim_p,
                                  x_bytes, out_bytes, act_bytes, 2)
                    <= 0.9 * budget):
                out2d = run_simple(tm2, None)
            else:
                out2d = run_ktiled()
    else:
        out2d = run_ktiled()

    return out2d.reshape(*lead, odim)


# ---------------------------------------------------------------------------
# Init helpers + self-test
# ---------------------------------------------------------------------------

def init_linear_params(key, fan_in, fan_out, dtype=jnp.float32):
    """Mimic torch.nn.Linear default init: U(-1/sqrt(fan_in), 1/sqrt(fan_in)).
    Returns weight already transposed to (fan_in, fan_out) plus bias (fan_out,)."""
    kw, kb = jax.random.split(key)
    bound = 1.0 / (fan_in ** 0.5)
    w = jax.random.uniform(kw, (fan_in, fan_out), dtype, minval=-bound, maxval=bound)
    b = jax.random.uniform(kb, (fan_out,), dtype, minval=-bound, maxval=bound)
    return w, b


if __name__ == "__main__":
    # Small shapes consistent with the module: batch=2, seq=8, idim=16,
    # hdim=32, odim=16 (channels-last nn.Linear path, norm='none').
    # TODO(synk): MaskedBatchNorm/MaskedLayerNorm ('bn'/'ln') and the
    # channel_first 1x1-conv path are not implemented (norm='none' only).
    batch, seq, idim, hdim, odim = 2, 8, 16, 32, 16

    key = jax.random.PRNGKey(0)
    kx, k1, k2 = jax.random.split(key, 3)

    x = jax.random.normal(kx, (batch, seq, idim), dtype=jnp.float32)
    w1, b1 = init_linear_params(k1, idim, hdim)
    w2, b2 = init_linear_params(k2, hdim, odim)

    params = prepare_mlp_params(w1, b1, w2, b2)   # pad + bf16 cast ONCE
    y = mlp_pallas(x, params)                     # out_dtype=jnp.bfloat16 also works
    y = jax.block_until_ready(y)

    # Pure-JAX reference using the same bf16 operands / chip activation dtype.
    _, _, _, act_dtype, _ = _chip_defaults()
    xb = x.reshape(-1, idim).astype(jnp.bfloat16)
    h_ref = jnp.dot(xb, w1.astype(jnp.bfloat16),
                    preferred_element_type=jnp.float32) + b1
    h_ref = h_ref.astype(act_dtype)
    h_ref = h_ref * jax.nn.sigmoid(h_ref)
    y_ref = jnp.dot(h_ref.astype(jnp.bfloat16), w2.astype(jnp.bfloat16),
                    preferred_element_type=jnp.float32) + b2
    y_ref = y_ref.reshape(batch, seq, odim).astype(x.dtype)
    assert jnp.allclose(y, y_ref, atol=2e-2, rtol=2e-2), "mismatch vs reference"

    print("KERNEL_OK")
</pallas_src>

<mosaic_0001>
module attributes {stable_mosaic.version = 11 : i64} {
  func.func @mlp_kernel(%arg0: i32, %arg1: memref<16x128xbf16, #tpu.memory_space<vmem>>, %arg2: memref<128x128xbf16, #tpu.memory_space<vmem>>, %arg3: memref<1x128xf32, #tpu.memory_space<vmem>>, %arg4: memref<128x128xbf16, #tpu.memory_space<vmem>>, %arg5: memref<1x128xf32, #tpu.memory_space<vmem>>, %arg6: memref<16x128xf32, #tpu.memory_space<vmem>>) attributes {dimension_semantics = [#tpu.dimension_semantics<parallel>], iteration_bounds = array<i64: 1>, scalar_prefetch = 0 : i64, scratch_operands = 0 : i64, tpu.core_type = #tpu.core_type<tc>, window_params = [{transform_indices = @transform_0, window_bounds = array<i64: 16, 128>}, {pipeline_mode = #tpu.pipeline_mode<synchronous>, transform_indices = @transform_1, window_bounds = array<i64: 128, 128>}, {pipeline_mode = #tpu.pipeline_mode<synchronous>, transform_indices = @transform_2, window_bounds = array<i64: 1, 128>}, {pipeline_mode = #tpu.pipeline_mode<synchronous>, transform_indices = @transform_3, window_bounds = array<i64: 128, 128>}, {pipeline_mode = #tpu.pipeline_mode<synchronous>, transform_indices = @transform_4, window_bounds = array<i64: 1, 128>}, {transform_indices = @transform_5, window_bounds = array<i64: 16, 128>}]} {
    %c0 = arith.constant 0 : index
    %c0_0 = arith.constant 0 : index
    %0 = vector.load %arg1[%c0, %c0_0] : memref<16x128xbf16, #tpu.memory_space<vmem>>, vector<16x128xbf16>
    %c0_1 = arith.constant 0 : index
    %c0_2 = arith.constant 0 : index
    %1 = vector.load %arg2[%c0_1, %c0_2] : memref<128x128xbf16, #tpu.memory_space<vmem>>, vector<128x128xbf16>
    %cst = arith.constant dense<0.000000e+00> : vector<16x128xf32>
    %2 = tpu.matmul %0, %1, %cst {dimension_numbers = #tpu.dot_dimension_numbers<[1], [0], [0], [1], [0, 0, 1, 1], [], []>} : vector<16x128xbf16>, vector<128x128xbf16>, vector<16x128xf32> -> vector<16x128xf32>
    %c0_3 = arith.constant 0 : index
    %c0_4 = arith.constant 0 : index
    %3 = vector.load %arg3[%c0_3, %c0_4] : memref<1x128xf32, #tpu.memory_space<vmem>>, vector<1x128xf32>
    %4 = vector.broadcast %3 : vector<1x128xf32> to vector<16x128xf32>
    %5 = arith.addf %2, %4 : vector<16x128xf32>
    %6 = arith.negf %5 : vector<16x128xf32>
    %7 = math.exp %6 : vector<16x128xf32>
    %cst_5 = arith.constant 1.000000e+00 : f32
    %8 = vector.broadcast %cst_5 : f32 to vector<16x128xf32>
    %9 = arith.addf %8, %7 : vector<16x128xf32>
    %10 = arith.divf %8, %9 : vector<16x128xf32>
    %11 = arith.mulf %5, %10 : vector<16x128xf32>
    %12 = arith.truncf %11 : vector<16x128xf32> to vector<16x128xbf16>
    %c0_6 = arith.constant 0 : index
    %c0_7 = arith.constant 0 : index
    %13 = vector.load %arg4[%c0_6, %c0_7] : memref<128x128xbf16, #tpu.memory_space<vmem>>, vector<128x128xbf16>
    %cst_8 = arith.constant dense<0.000000e+00> : vector<16x128xf32>
    %14 = tpu.matmul %12, %13, %cst_8 {dimension_numbers = #tpu.dot_dimension_numbers<[1], [0], [0], [1], [0, 0, 1, 1], [], []>} : vector<16x128xbf16>, vector<128x128xbf16>, vector<16x128xf32> -> vector<16x128xf32>
    %c0_9 = arith.constant 0 : index
    %c0_10 = arith.constant 0 : index
    %15 = vector.load %arg5[%c0_9, %c0_10] : memref<1x128xf32, #tpu.memory_space<vmem>>, vector<1x128xf32>
    %16 = vector.broadcast %15 : vector<1x128xf32> to vector<16x128xf32>
    %17 = arith.addf %14, %16 : vector<16x128xf32>
    %c0_11 = arith.constant 0 : index
    %c0_12 = arith.constant 0 : index
    %18 = vector.load %arg6[%c0_11, %c0_12] : memref<16x128xf32, #tpu.memory_space<vmem>>, vector<16x128xf32>
    tpu.vector_store %arg6[%c0_11, %c0_12], %17 {strides = array<i32>} : memref<16x128xf32, #tpu.memory_space<vmem>>, vector<16x128xf32>,
    return
  }
  func.func @transform_0(%arg0: i32) -> (i32, i32) {
    %c0_i32 = arith.constant 0 : i32
    %c0_i32_0 = arith.constant 0 : i32
    return %arg0, %c0_i32 : i32, i32
  }
  func.func @transform_1(%arg0: i32) -> (i32, i32) {
    %c0_i32 = arith.constant 0 : i32
    %c0_i32_0 = arith.constant 0 : i32
    %c0_i32_1 = arith.constant 0 : i32
    return %c0_i32, %c0_i32_0 : i32, i32
  }
  func.func @transform_2(%arg0: i32) -> (i32, i32) {
    %c0_i32 = arith.constant 0 : i32
    %c0_i32_0 = arith.constant 0 : i32
    %c0_i32_1 = arith.constant 0 : i32
    return %c0_i32, %c0_i32_0 : i32, i32
  }
  func.func @transform_3(%arg0: i32) -> (i32, i32) {
    %c0_i32 = arith.constant 0 : i32
    %c0_i32_0 = arith.constant 0 : i32
    %c0_i32_1 = arith.constant 0 : i32
    return %c0_i32, %c0_i32_0 : i32, i32
  }
  func.func @transform_4(%arg0: i32) -> (i32, i32) {
    %c0_i32 = arith.constant 0 : i32
    %c0_i32_0 = arith.constant 0 : i32
    %c0_i32_1 = arith.constant 0 : i32
    return %c0_i32, %c0_i32_0 : i32, i32
  }
  func.func @transform_5(%arg0: i32) -> (i32, i32) {
    %c0_i32 = arith.constant 0 : i32
    %c0_i32_0 = arith.constant 0 : i32
    return %arg0, %c0_i32 : i32, i32
  }
}

module attributes {stable_mosaic.version = 11 : i64} {
  func.func @mlp_kernel(%arg0: i32, %arg1: memref<16x128xbf16, #tpu.memory_space<vmem>>, %arg2: memref<128x128xbf16, #tpu.memory_space<vmem>>, %arg3: memref<1x128xf32, #tpu.memory_space<vmem>>, %arg4: memref<128x128xbf16, #tpu.memory_space<vmem>>, %arg5: memref<1x128xf32, #tpu.memory_space<vmem>>, %arg6: memref<16x128xf32, #tpu.memory_space<vmem>>) attributes {dimension_semantics = [#tpu.dimension_semantics<parallel>], iteration_bounds = array<i64: 1>, scalar_prefetch = 0 : i64, scratch_operands = 0 : i64, tpu.core_type = #tpu.core_type<tc>, window_params = [{transform_indices = @transform_0, window_bounds = array<i64: 16, 128>}, {pipeline_mode = #tpu.pipeline_mode<synchronous>, transform_indices = @transform_1, window_bounds = array<i64: 128, 128>}, {pipeline_mode = #tpu.pipeline_mode<synchronous>, transform_indices = @transform_2, window_bounds = array<i64: 1, 128>}, {pipeline_mode = #tpu.pipeline_mode<synchronous>, transform_indices = @transform_3, window_bounds = array<i64: 128, 128>}, {pipeline_mode = #tpu.pipeline_mode<synchronous>, transform_indices = @transform_4, window_bounds = array<i64: 1, 128>}, {transform_indices = @transform_5, window_bounds = array<i64: 16, 128>}]} {
    %c0 = arith.constant 0 : index
    %c0_0 = arith.constant 0 : index
    %0 = vector.load %arg1[%c0, %c0_0] : memref<16x128xbf16, #tpu.memory_space<vmem>>, vector<16x128xbf16>
    %c0_1 = arith.constant 0 : index
    %c0_2 = arith.constant 0 : index
    %1 = vector.load %arg2[%c0_1, %c0_2] : memref<128x128xbf16, #tpu.memory_space<vmem>>, vector<128x128xbf16>
    %cst = arith.constant dense<0.000000e+00> : vector<16x128xf32>
    %2 = tpu.matmul %0, %1, %cst {dimension_numbers = #tpu.dot_dimension_numbers<[1], [0], [0], [1], [0, 0, 1, 1], [], []>} : vector<16x128xbf16>, vector<128x128xbf16>, vector<16x128xf32> -> vector<16x128xf32>
    %c0_3 = arith.constant 0 : index
    %c0_4 = arith.constant 0 : index
    %3 = vector.load %arg3[%c0_3, %c0_4] : memref<1x128xf32, #tpu.memory_space<vmem>>, vector<1x128xf32>
    %4 = vector.broadcast %3 : vector<1x128xf32> to vector<16x128xf32>
    %5 = arith.addf %2, %4 : vector<16x128xf32>
    %6 = arith.negf %5 : vector<16x128xf32>
    %7 = math.exp %6 : vector<16x128xf32>
    %cst_5 = arith.constant 1.000000e+00 : f32
    %8 = vector.broadcast %cst_5 : f32 to vector<16x128xf32>
    %9 = arith.addf %8, %7 : vector<16x128xf32>
    %10 = arith.divf %8, %9 : vector<16x128xf32>
    %11 = arith.mulf %5, %10 : vector<16x128xf32>
    %12 = arith.truncf %11 : vector<16x128xf32> to vector<16x128xbf16>
    %c0_6 = arith.constant 0 : index
    %c0_7 = arith.constant 0 : index
    %13 = vector.load %arg4[%c0_6, %c0_7] : memref<128x128xbf16, #tpu.memory_space<vmem>>, vector<128x128xbf16>
    %cst_8 = arith.constant dense<0.000000e+00> : vector<16x128xf32>
    %14 = tpu.matmul %12, %13, %cst_8 {dimension_numbers = #tpu.dot_dimension_numbers<[1], [0], [0], [1], [0, 0, 1, 1], [], []>} : vector<16x128xbf16>, vector<128x128xbf16>, vector<16x128xf32> -> vector<16x128xf32>
    %c0_9 = arith.constant 0 : index
    %c0_10 = arith.constant 0 : index
    %15 = vector.load %arg5[%c0_9, %c0_10] : memref<1x128xf32, #tpu.memory_space<vmem>>, vector<1x128xf32>
    %16 = vector.broadcast %15 : vector<1x128xf32> to vector<16x128xf32>
    %17 = arith.addf %14, %16 : vector<16x128xf32>
    %c0_11 = arith.constant 0 : index
    %c0_12 = arith.constant 0 : index
    %18 = vector.load %arg6[%c0_11, %c0_12] : memref<16x128xf32, #tpu.memory_space<vmem>>, vector<16x128xf32>
    tpu.vector_store %arg6[%c0_11, %c0_12], %17 {strides = array<i32>} : memref<16x128xf32, #tpu.memory_space<vmem>>, vector<16x128xf32>,
    return
  }
  func.func @transform_0(%arg0: i32) -> (i32, i32) {
    %c0_i32 = arith.constant 0 : i32
    %c0_i32_0 = arith.constant 0 : i32
    return %arg0, %c0_i32 : i32, i32
  }
  func.func @transform_1(%arg0: i32) -> (i32, i32) {
    %c0_i32 = arith.constant 0 : i32
    %c0_i32_0 = arith.constant 0 : i32
    %c0_i32_1 = arith.constant 0 : i32
    return %c0_i32, %c0_i32_0 : i32, i32
  }
  func.func @transform_2(%arg0: i32) -> (i32, i32) {
    %c0_i32 = arith.constant 0 : i32
    %c0_i32_0 = arith.constant 0 : i32
    %c0_i32_1 = arith.constant 0 : i32
    return %c0_i32, %c0_i32_0 : i32, i32
  }
  func.func @transform_3(%arg0: i32) -> (i32, i32) {
    %c0_i32 = arith.constant 0 : i32
    %c0_i32_0 = arith.constant 0 : i32
    %c0_i32_1 = arith.constant 0 : i32
    return %c0_i32, %c0_i32_0 : i32, i32
  }
  func.func @transform_4(%arg0: i32) -> (i32, i32) {
    %c0_i32 = arith.constant 0 : i32
    %c0_i32_0 = arith.constant 0 : i32
    %c0_i32_1 = arith.constant 0 : i32
    return %c0_i32, %c0_i32_0 : i32, i32
  }
  func.func @transform_5(%arg0: i32) -> (i32, i32) {
    %c0_i32 = arith.constant 0 : i32
    %c0_i32_0 = arith.constant 0 : i32
    return %arg0, %c0_i32 : i32, i32
  }
}

</mosaic_0001>

<bundles_post_ra>
// kernel: tpu_custom_call.1
= control target key start
LH: loop header
LB: loop body
LE: loop exit
PB: predicated region body
PF: predicated region fallthrough
CT: control target
= control target key end

     0   :  { %10 = vsyncpa [#allocation3], 0  ;;  %s648_s0 = inlined_call_operand.hbm [shape: bf16[16,128], index: 0, kind: input, shape index: {}]   ;;  %s649_s1 = inlined_call_operand.hbm [shape: bf16[128,128], index: 1, kind: input, shape index: {}]   ;;  %s650_s2 = inlined_call_operand.vmem [shape: f32[1,128], index: 2, kind: input, shape index: {}]   ;;  %s651_s3 = inlined_call_operand.hbm [shape: bf16[128,128], index: 3, kind: input, shape index: {}]   ;;  %s652_s4 = inlined_call_operand.vmem [shape: f32[1,128], index: 4, kind: input, shape index: {}]   ;;  %s653_s5 = inlined_call_operand.hbm [shape: f32[16,128], index: 5, kind: output, shape index: {}]  }
   0x1   :  { %11 = vsyncpa [#allocation6], 0 }
   0x2   :  { %12 = vsyncpa [#allocation4], 0  ;;  %s538_s18 = smov [#allocation5]   ;;  %s539_s20 = smov [#allocation2]  }
   0x3   :  { %s30_s19 = sshll.u32 %s538_s18, 4  ;;  %s18_s21 = sshll.u32 %s539_s20, 4  ;;  %s31_s19 = int_to_ptr.vmem [resolvable:$true] %s30_s19  ;;  %s578_s21 = int_to_ptr.vmem [resolvable:$true] %s18_s21 }
   0x4   :  { %s444_s24 = scalar_lea.hbm %s649_s1, 1024 }
   0x5   :  { %p445_p0 = scmp.ne.s32.totalorder %s649_s1, %s444_s24  ;;  %p448_p1 = scmp.lt.u32.totalorder %s444_s24, %s649_s1 }
   0x7   :  { %p450_p2 = pnand %p448_p1, %p445_p0 }
   0x9   :  { %453 = shalt.err (!%p450_p2)
}
   0xa   :  { %s454_s29 = scalar_lea.vmem %s31_s19, 1024  ;;  %p459_p4 = scmp.lt.s32.totalorder %s31_s19, %s31_s19 }
   0xb   :  { %p455_p3 = scmp.ne.s32.totalorder %s31_s19, %s454_s29  ;;  %p460_p5 = scmp.lt.s32.totalorder %s454_s29, %s454_s29 }
   0xd   :  { %p461_p6 = por %p460_p5, %p459_p4 }
   0xf   :  { %p462_p7 = pnand %p461_p6, %p455_p3 }
  0x11   :  { %465 = shalt.err (!%p462_p7)
}
  0x12   :  { %s540_s30 = smov 64   ;;  %s541_s6 = smov 4  }
  0x13   :  { %36 = dma.hbm_to_vmem [thread:$0]  %s649_s1, 1024, %s31_s19, [#allocation6], %s540_s30, %s540_s30, %s541_s6  }
  0x14   :  { %s466_s11 = scalar_lea.hbm %s648_s0, 128 }
  0x15   :  { %p467_p8 = scmp.ne.s32.totalorder %s648_s0, %s466_s11  ;;  %p470_p9 = scmp.lt.u32.totalorder %s466_s11, %s648_s0 }
  0x17   :  { %p472_p10 = pnand %p470_p9, %p467_p8 }
  0x19   :  { %475 = shalt.err (!%p472_p10)
}
  0x1a   :  { %s476_s16 = scalar_lea.vmem %s578_s21, 128  ;;  %p481_p12 = scmp.lt.s32.totalorder %s578_s21, %s578_s21 }
  0x1b   :  { %p477_p11 = scmp.ne.s32.totalorder %s578_s21, %s476_s16  ;;  %p482_p13 = scmp.lt.s32.totalorder %s476_s16, %s476_s16 }
  0x1d   :  { %p483_p0 = por %p482_p13, %p481_p12 }
  0x1f   :  { %p484_p1 = pnand %p483_p0, %p477_p11 }
  0x21   :  { %487 = shalt.err (!%p484_p1)
}
  0x22   :  { %24 = dma.hbm_to_vmem [thread:$0]  %s648_s0, 128, %s578_s21, [#allocation3], %s540_s30, %s540_s30, %s541_s6  }
  0x23   :  { %s542_s18 = smov [#allocation7]   ;;  %s488_s23 = scalar_lea.hbm %s651_s3, 1024 }
  0x24   :  { %s44_s19 = sshll.u32 %s542_s18, 4  ;;  %p489_p2 = scmp.ne.s32.totalorder %s651_s3, %s488_s23  ;;  %s45_s19 = int_to_ptr.vmem [resolvable:$true] %s44_s19 }
  0x25   :  { %p492_p3 = scmp.lt.u32.totalorder %s488_s23, %s651_s3 }
  0x27   :  { %p494_p4 = pnand %p492_p3, %p489_p2 }
  0x29   :  { %497 = shalt.err (!%p494_p4)
}
  0x2a   :  { %s498_s28 = scalar_lea.vmem %s45_s19, 1024  ;;  %p503_p6 = scmp.lt.s32.totalorder %s45_s19, %s45_s19 }
  0x2b   :  { %p499_p5 = scmp.ne.s32.totalorder %s45_s19, %s498_s28  ;;  %p504_p7 = scmp.lt.s32.totalorder %s498_s28, %s498_s28 }
  0x2d   :  { %p505_p8 = por %p504_p7, %p503_p6 }
  0x2f   :  { %p506_p9 = pnand %p505_p8, %p499_p5 }
  0x31   :  { %509 = shalt.err (!%p506_p9)
}
  0x32   :  { %50 = dma.hbm_to_vmem [thread:$0]  %s651_s3, 1024, %s45_s19, [#allocation6], %s540_s30, %s540_s30, %s541_s6  }
  0x33   :  { %532 = dma.done.wait [#allocation3], 128  }
  0x34   :  { %533 = vsyncadd [#allocation3], 4294967168 }
  0x35   :  { %534 = dma.done.wait [#allocation6], 2048  }
  0x36   :  { %535 = vsyncadd [#allocation6], 4294965248  ;;  %v543_v0 = vmov 0.0   ;;  %vm544_vm0 = vmmov 0   ;;  %v419_v1 = vld [vmem:[#allocation5] sm:$0xff]   ;;  %v420_v2 = vld [vmem:[#allocation5 + $0x8] sm:$0xff]  }
  0x37   :  { %369 = vmatprep.subr.bf16.mxu0 %v543_v0  ;;  %385 = vmatprep.mubr.msk.bf16.mxu0 %vm544_vm0, %v543_v0  ;;  %v421_v3 = vld [vmem:[#allocation5 + $0x10] sm:$0xff]   ;;  %v422_v4 = vld [vmem:[#allocation5 + $0x18] sm:$0xff]   ;;  %v423_v5 = vld [vmem:[#allocation5 + $0x20] sm:$0xff]   ;;  %s545_s6 = smov [#allocation8]  }
  0x38   :  { %389 = vmatprep.subr.bf16.mxu1 %v543_v0  ;;  %405 = vmatprep.mubr.msk.bf16.mxu1 %vm544_vm0, %v543_v0  ;;  %v424_v6 = vld [vmem:[#allocation5 + $0x28] sm:$0xff]   ;;  %v425_v7 = vld [vmem:[#allocation5 + $0x30] sm:$0xff]   ;;  %v426_v8 = vld [vmem:[#allocation5 + $0x38] sm:$0xff]   ;;  %s317_s7 = sshll.u32 %s545_s6, 4  ;;  %s318_s7 = int_to_ptr.vmem [resolvable:$true] %s317_s7 }
  0x39   :  { %370 = vmatpush3.bf16.msra.mxu0 %v419_v1  ;;  %v427_v9 = vld [vmem:[#allocation2] sm:$0xff]   ;;  %v428_v10 = vld [vmem:[#allocation7] sm:$0xff]   ;;  %v429_v11 = vld [vmem:[#allocation7 + $0x8] sm:$0xff]   ;;  %s510_s8 = scalar_lea.vmem %s318_s7, 256  ;;  %p515_p11 = scmp.lt.s32.totalorder %s318_s7, %s318_s7 }
  0x3a   :  { %371 = vmatprep.subr.bf16.mxu0 %v543_v0  ;;  %390 = vmatpush3.bf16.msra.mxu1 %v428_v10  ;;  %v430_v12 = vld [vmem:[#allocation7 + $0x10] sm:$0xff]   ;;  %v431_v13 = vld [vmem:[#allocation7 + $0x18] sm:$0xff]   ;;  %v432_v14 = vld [vmem:[#allocation7 + $0x20] sm:$0xff]   ;;  %p511_p10 = scmp.ne.s32.totalorder %s318_s7, %s510_s8  ;;  %p516_p12 = scmp.lt.s32.totalorder %s510_s8, %s510_s8 }
  0x3b   :  { %391 = vmatprep.subr.bf16.mxu1 %v543_v0  ;;  %v433_v15 = vld [vmem:[#allocation7 + $0x28] sm:$0xff]   ;;  %v434_v16 = vld [vmem:[#allocation7 + $0x30] sm:$0xff]   ;;  %v435_v17 = vld [vmem:[#allocation7 + $0x38] sm:$0xff]  }
  0x3c   :  { %v330_v18 = vld [vmem:[%s650_s2] ss:$0 sm:$0xff]  ;;  %p517_p13 = por %p516_p12, %p515_p11 }
  0x3d   :  { %372 = vmatpush3.bf16.msra.mxu0 %v420_v2  ;;  %v342_v36 = vld [vmem:[%s652_s4] ss:$0 sm:$0xff] }
  0x3e   :  { %373 = vmatprep.subr.bf16.mxu0 %v543_v0  ;;  %392 = vmatpush3.bf16.msra.mxu1 %v429_v11  ;;  %p518_p0 = pnand %p517_p13, %p511_p10 }
  0x3f   :  { %393 = vmatprep.subr.bf16.mxu1 %v543_v0 }
  0x41   :  { %374 = vmatpush3.bf16.msra.mxu0 %v421_v3 }
  0x42   :  { %375 = vmatprep.subr.bf16.mxu0 %v543_v0  ;;  %394 = vmatpush3.bf16.msra.mxu1 %v430_v12 }
  0x43   :  { %395 = vmatprep.subr.bf16.mxu1 %v543_v0 }
  0x45   :  { %376 = vmatpush3.bf16.msra.mxu0 %v422_v4 }
  0x46   :  { %377 = vmatprep.subr.bf16.mxu0 %v543_v0  ;;  %396 = vmatpush3.bf16.msra.mxu1 %v431_v13 }
  0x47   :  { %397 = vmatprep.subr.bf16.mxu1 %v543_v0 }
  0x49   :  { %378 = vmatpush3.bf16.msra.mxu0 %v423_v5 }
  0x4a   :  { %379 = vmatprep.subr.bf16.mxu0 %v543_v0  ;;  %398 = vmatpush3.bf16.msra.mxu1 %v432_v14 }
  0x4b   :  { %399 = vmatprep.subr.bf16.mxu1 %v543_v0 }
  0x4d   :  { %380 = vmatpush3.bf16.msra.mxu0 %v424_v6 }
  0x4e   :  { %381 = vmatprep.subr.bf16.mxu0 %v543_v0  ;;  %400 = vmatpush3.bf16.msra.mxu1 %v433_v15 }
  0x4f   :  { %401 = vmatprep.subr.bf16.mxu1 %v543_v0 }
  0x51   :  { %382 = vmatpush3.bf16.msra.mxu0 %v425_v7 }
  0x52   :  { %383 = vmatprep.subr.bf16.mxu0 %v543_v0  ;;  %402 = vmatpush3.bf16.msra.mxu1 %v434_v16 }
  0x53   :  { %403 = vmatprep.subr.bf16.mxu1 %v543_v0 }
  0x55   :  { %384 = vmatpush3.bf16.msra.mxu0 %v426_v8 }
  0x56   :  { %404 = vmatpush3.bf16.msra.mxu1 %v435_v17 }
  0x58   :  { %386 = vmatmul.mubr.bf16.vlgmr.msra.gmra.mrb[0].mxu0 %v427_v9 }
 0x12b   :  { %v176_v19 = vpop.f32.mrb[0].mxu0 }
 0x12c   :  { %v177_v20 = vadd.f32 %v330_v18, %v176_v19  ;;  %v387_v21 = vpop.f32.mrb[1].mxu0 }
 0x12d   :  { %v179_v22 = vpop.f32.mrb[2].mxu0 }
 0x12e   :  { %v340_v23 = vmul.f32 -1.442695, %v177_v20  ;;  %v180_v24 = vadd.f32 %v330_v18, %v179_v22  ;;  %v388_v25 = vpop.f32.mrb[3].mxu0 }
 0x130   :  { %436 = vpow2.f32 %v340_v23  ;;  %v341_v26 = vmul.f32 -1.442695, %v180_v24 }
 0x132   :  { %438 = vpow2.f32 %v341_v26 }
 0x13a   :  { %v437_v27 = vpop.eup %436 }
 0x13b   :  { %v189_v28 = vadd.f32 1.0, %v437_v27 }
 0x13c   :  { %v439_v29 = vpop.eup %438 }
 0x13d   :  { %440 = vrcp.f32 %v189_v28  ;;  %v190_v30 = vadd.f32 1.0, %v439_v29 }
 0x13f   :  { %442 = vrcp.f32 %v190_v30 }
 0x147   :  { %v441_v31 = vpop.eup %440 }
 0x148   :  { %v195_v33 = vmul.f32 %v441_v31, %v177_v20 }
 0x149   :  { %v443_v32 = vpop.eup %442 }
 0x14a   :  { %v196_v34 = vmul.f32 %v443_v32, %v180_v24 }
 0x14c   :  { %v197_v35 = vpack.c.bf16 %v196_v34, %v195_v33 }
 0x14e   :  { %406 = vmatmul.mubr.bf16.vlgmr.msra.gmra.mrb[0].mxu1 %v197_v35 }
 0x221   :  { %v303_v37 = vpop.f32.mrb[0].mxu1 }
 0x222   :  { %v304_v38 = vadd.f32 %v342_v36, %v303_v37  ;;  %v407_v39 = vpop.f32.mrb[1].mxu1 }
 0x223   :  { %v306_v40 = vpop.f32.mrb[2].mxu1 }
 0x224   :  { %310 = vst [vmem:[#allocation8] sm:$0xff] %v304_v38  ;;  %v307_v41 = vadd.f32 %v342_v36, %v306_v40  ;;  %v408_v42 = vpop.f32.mrb[3].mxu1 }
 0x226   :  { %311 = vst [vmem:[#allocation8 + $0x8] sm:$0xff] %v307_v41 }
 0x227   :  { %521 = shalt.err (!%p518_p0)
}
 0x228   :  { %s522_s10 = scalar_lea.hbm %s653_s5, 256 }
 0x229   :  { %p523_p1 = scmp.ne.s32.totalorder %s653_s5, %s522_s10  ;;  %p526_p2 = scmp.lt.u32.totalorder %s522_s10, %s653_s5 }
 0x22b   :  { %p528_p3 = pnand %p526_p2, %p523_p1 }
 0x22d   :  { %531 = shalt.err (!%p528_p3)
}
 0x22e   :  { %s546_s15 = smov 128   ;;  %s547_s16 = smov 8  }
 0x22f   :  { %323 = dma.vmem_to_hbm [thread:$0]  %s318_s7, 256, %s653_s5, [#allocation4], %s546_s15, %s546_s15, %s547_s16  }
 0x230   :  { %536 = dma.done.wait [#allocation4], 256  }
 0x231   :  { %537 = vsyncadd [#allocation4], 4294967040 }
 0x232   :  { %327 = vsyncpa [#allocation3], 1 }
 0x233   :  { %328 = vsyncpa [#allocation6], 1 }
 0x234   :  { %329 = vsyncpa [#allocation4], 1 }

// kernel: tpu_custom_call.1
= control target key start
LH: loop header
LB: loop body
LE: loop exit
PB: predicated region body
PF: predicated region fallthrough
CT: control target
= control target key end

     0   :  { %10 = vsyncpa [#allocation3], 0  ;;  %s648_s0 = inlined_call_operand.hbm [shape: bf16[16,128], index: 0, kind: input, shape index: {}]   ;;  %s649_s1 = inlined_call_operand.hbm [shape: bf16[128,128], index: 1, kind: input, shape index: {}]   ;;  %s650_s2 = inlined_call_operand.vmem [shape: f32[1,128], index: 2, kind: input, shape index: {}]   ;;  %s651_s3 = inlined_call_operand.hbm [shape: bf16[128,128], index: 3, kind: input, shape index: {}]   ;;  %s652_s4 = inlined_call_operand.vmem [shape: f32[1,128], index: 4, kind: input, shape index: {}]   ;;  %s653_s5 = inlined_call_operand.hbm [shape: f32[16,128], index: 5, kind: output, shape index: {}]  }
   0x1   :  { %11 = vsyncpa [#allocation6], 0 }
   0x2   :  { %12 = vsyncpa [#allocation4], 0  ;;  %s538_s18 = smov [#allocation5]   ;;  %s539_s20 = smov [#allocation2]  }
   0x3   :  { %s30_s19 = sshll.u32 %s538_s18, 4  ;;  %s18_s21 = sshll.u32 %s539_s20, 4  ;;  %s31_s19 = int_to_ptr.vmem [resolvable:$true] %s30_s19  ;;  %s578_s21 = int_to_ptr.vmem [resolvable:$true] %s18_s21 }
   0x4   :  { %s444_s24 = scalar_lea.hbm %s649_s1, 1024 }
   0x5   :  { %p445_p0 = scmp.ne.s32.totalorder %s649_s1, %s444_s24  ;;  %p448_p1 = scmp.lt.u32.totalorder %s444_s24, %s649_s1 }
   0x7   :  { %p450_p2 = pnand %p448_p1, %p445_p0 }
   0x9   :  { %453 = shalt.err (!%p450_p2)
}
   0xa   :  { %s454_s29 = scalar_lea.vmem %s31_s19, 1024  ;;  %p459_p4 = scmp.lt.s32.totalorder %s31_s19, %s31_s19 }
   0xb   :  { %p455_p3 = scmp.ne.s32.totalorder %s31_s19, %s454_s29  ;;  %p460_p5 = scmp.lt.s32.totalorder %s454_s29, %s454_s29 }
   0xd   :  { %p461_p6 = por %p460_p5, %p459_p4 }
   0xf   :  { %p462_p7 = pnand %p461_p6, %p455_p3 }
  0x11   :  { %465 = shalt.err (!%p462_p7)
}
  0x12   :  { %s540_s30 = smov 64   ;;  %s541_s6 = smov 4  }
  0x13   :  { %36 = dma.hbm_to_vmem [thread:$0]  %s649_s1, 1024, %s31_s19, [#allocation6], %s540_s30, %s540_s30, %s541_s6  }
  0x14   :  { %s466_s11 = scalar_lea.hbm %s648_s0, 128 }
  0x15   :  { %p467_p8 = scmp.ne.s32.totalorder %s648_s0, %s466_s11  ;;  %p470_p9 = scmp.lt.u32.totalorder %s466_s11, %s648_s0 }
  0x17   :  { %p472_p10 = pnand %p470_p9, %p467_p8 }
  0x19   :  { %475 = shalt.err (!%p472_p10)
}
  0x1a   :  { %s476_s16 = scalar_lea.vmem %s578_s21, 128  ;;  %p481_p12 = scmp.lt.s32.totalorder %s578_s21, %s578_s21 }
  0x1b   :  { %p477_p11 = scmp.ne.s32.totalorder %s578_s21, %s476_s16  ;;  %p482_p13 = scmp.lt.s32.totalorder %s476_s16, %s476_s16 }
  0x1d   :  { %p483_p0 = por %p482_p13, %p481_p12 }
  0x1f   :  { %p484_p1 = pnand %p483_p0, %p477_p11 }
  0x21   :  { %487 = shalt.err (!%p484_p1)
}
  0x22   :  { %24 = dma.hbm_to_vmem [thread:$0]  %s648_s0, 128, %s578_s21, [#allocation3], %s540_s30, %s540_s30, %s541_s6  }
  0x23   :  { %s542_s18 = smov [#allocation7]   ;;  %s488_s23 = scalar_lea.hbm %s651_s3, 1024 }
  0x24   :  { %s44_s19 = sshll.u32 %s542_s18, 4  ;;  %p489_p2 = scmp.ne.s32.totalorder %s651_s3, %s488_s23  ;;  %s45_s19 = int_to_ptr.vmem [resolvable:$true] %s44_s19 }
  0x25   :  { %p492_p3 = scmp.lt.u32.totalorder %s488_s23, %s651_s3 }
  0x27   :  { %p494_p4 = pnand %p492_p3, %p489_p2 }
  0x29   :  { %497 = shalt.err (!%p494_p4)
}
  0x2a   :  { %s498_s28 = scalar_lea.vmem %s45_s19, 1024  ;;  %p503_p6 = scmp.lt.s32.totalorder %s45_s19, %s45_s19 }
  0x2b   :  { %p499_p5 = scmp.ne.s32.totalorder %s45_s19, %s498_s28  ;;  %p504_p7 = scmp.lt.s32.totalorder %s498_s28, %s498_s28 }
  0x2d   :  { %p505_p8 = por %p504_p7, %p503_p6 }
  0x2f   :  { %p506_p9 = pnand %p505_p8, %p499_p5 }
  0x31   :  { %509 = shalt.err (!%p506_p9)
}
  0x32   :  { %50 = dma.hbm_to_vmem [thread:$0]  %s651_s3, 1024, %s45_s19, [#allocation6], %s540_s30, %s540_s30, %s541_s6  }
  0x33   :  { %532 = dma.done.wait [#allocation3], 128  }
  0x34   :  { %533 = vsyncadd [#allocation3], 4294967168 }
  0x35   :  { %534 = dma.done.wait [#allocation6], 2048  }
  0x36   :  { %535 = vsyncadd [#allocation6], 4294965248  ;;  %v543_v0 = vmov 0.0   ;;  %vm544_vm0 = vmmov 0   ;;  %v419_v1 = vld [vmem:[#allocation5] sm:$0xff]   ;;  %v420_v2 = vld [vmem:[#allocation5 + $0x8] sm:$0xff]  }
  0x37   :  { %369 = vmatprep.subr.bf16.mxu0 %v543_v0  ;;  %385 = vmatprep.mubr.msk.bf16.mxu0 %vm544_vm0, %v543_v0  ;;  %v421_v3 = vld [vmem:[#allocation5 + $0x10] sm:$0xff]   ;;  %v422_v4 = vld [vmem:[#allocation5 + $0x18] sm:$0xff]   ;;  %v423_v5 = vld [vmem:[#allocation5 + $0x20] sm:$0xff]   ;;  %s545_s6 = smov [#allocation8]  }
  0x38   :  { %389 = vmatprep.subr.bf16.mxu1 %v543_v0  ;;  %405 = vmatprep.mubr.msk.bf16.mxu1 %vm544_vm0, %v543_v0  ;;  %v424_v6 = vld [vmem:[#allocation5 + $0x28] sm:$0xff]   ;;  %v425_v7 = vld [vmem:[#allocation5 + $0x30] sm:$0xff]   ;;  %v426_v8 = vld [vmem:[#allocation5 + $0x38] sm:$0xff]   ;;  %s317_s7 = sshll.u32 %s545_s6, 4  ;;  %s318_s7 = int_to_ptr.vmem [resolvable:$true] %s317_s7 }
  0x39   :  { %370 = vmatpush3.bf16.msra.mxu0 %v419_v1  ;;  %v427_v9 = vld [vmem:[#allocation2] sm:$0xff]   ;;  %v428_v10 = vld [vmem:[#allocation7] sm:$0xff]   ;;  %v429_v11 = vld [vmem:[#allocation7 + $0x8] sm:$0xff]   ;;  %s510_s8 = scalar_lea.vmem %s318_s7, 256  ;;  %p515_p11 = scmp.lt.s32.totalorder %s318_s7, %s318_s7 }
  0x3a   :  { %371 = vmatprep.subr.bf16.mxu0 %v543_v0  ;;  %390 = vmatpush3.bf16.msra.mxu1 %v428_v10  ;;  %v430_v12 = vld [vmem:[#allocation7 + $0x10] sm:$0xff]   ;;  %v431_v13 = vld [vmem:[#allocation7 + $0x18] sm:$0xff]   ;;  %v432_v14 = vld [vmem:[#allocation7 + $0x20] sm:$0xff]   ;;  %p511_p10 = scmp.ne.s32.totalorder %s318_s7, %s510_s8  ;;  %p516_p12 = scmp.lt.s32.totalorder %s510_s8, %s510_s8 }
  0x3b   :  { %391 = vmatprep.subr.bf16.mxu1 %v543_v0  ;;  %v433_v15 = vld [vmem:[#allocation7 + $0x28] sm:$0xff]   ;;  %v434_v16 = vld [vmem:[#allocation7 + $0x30] sm:$0xff]   ;;  %v435_v17 = vld [vmem:[#allocation7 + $0x38] sm:$0xff]  }
  0x3c   :  { %v330_v18 = vld [vmem:[%s650_s2] ss:$0 sm:$0xff]  ;;  %p517_p13 = por %p516_p12, %p515_p11 }
  0x3d   :  { %372 = vmatpush3.bf16.msra.mxu0 %v420_v2  ;;  %v342_v36 = vld [vmem:[%s652_s4] ss:$0 sm:$0xff] }
  0x3e   :  { %373 = vmatprep.subr.bf16.mxu0 %v543_v0  ;;  %392 = vmatpush3.bf16.msra.mxu1 %v429_v11  ;;  %p518_p0 = pnand %p517_p13, %p511_p10 }
  0x3f   :  { %393 = vmatprep.subr.bf16.mxu1 %v543_v0 }
  0x41   :  { %374 = vmatpush3.bf16.msra.mxu0 %v421_v3 }
  0x42   :  { %375 = vmatprep.subr.bf16.mxu0 %v543_v0  ;;  %394 = vmatpush3.bf16.msra.mxu1 %v430_v12 }
  0x43   :  { %395 = vmatprep.subr.bf16.mxu1 %v543_v0 }
  0x45   :  { %376 = vmatpush3.bf16.msra.mxu0 %v422_v4 }
  0x46   :  { %377 = vmatprep.subr.bf16.mxu0 %v543_v0  ;;  %396 = vmatpush3.bf16.msra.mxu1 %v431_v13 }
  0x47   :  { %397 = vmatprep.subr.bf16.mxu1 %v543_v0 }
  0x49   :  { %378 = vmatpush3.bf16.msra.mxu0 %v423_v5 }
  0x4a   :  { %379 = vmatprep.subr.bf16.mxu0 %v543_v0  ;;  %398 = vmatpush3.bf16.msra.mxu1 %v432_v14 }
  0x4b   :  { %399 = vmatprep.subr.bf16.mxu1 %v543_v0 }
  0x4d   :  { %380 = vmatpush3.bf16.msra.mxu0 %v424_v6 }
  0x4e   :  { %381 = vmatprep.subr.bf16.mxu0 %v543_v0  ;;  %400 = vmatpush3.bf16.msra.mxu1 %v433_v15 }
  0x4f   :  { %401 = vmatprep.subr.bf16.mxu1 %v543_v0 }
  0x51   :  { %382 = vmatpush3.bf16.msra.mxu0 %v425_v7 }
  0x52   :  { %383 = vmatprep.subr.bf16.mxu0 %v543_v0  ;;  %402 = vmatpush3.bf16.msra.mxu1 %v434_v16 }
  0x53   :  { %403 = vmatprep.subr.bf16.mxu1 %v543_v0 }
  0x55   :  { %384 = vmatpush3.bf16.msra.mxu0 %v426_v8 }
  0x56   :  { %404 = vmatpush3.bf16.msra.mxu1 %v435_v17 }
  0x58   :  { %386 = vmatmul.mubr.bf16.vlgmr.msra.gmra.mrb[0].mxu0 %v427_v9 }
 0x12b   :  { %v176_v19 = vpop.f32.mrb[0].mxu0 }
 0x12c   :  { %v177_v20 = vadd.f32 %v330_v18, %v176_v19  ;;  %v387_v21 = vpop.f32.mrb[1].mxu0 }
 0x12d   :  { %v179_v22 = vpop.f32.mrb[2].mxu0 }
 0x12e   :  { %v340_v23 = vmul.f32 -1.442695, %v177_v20  ;;  %v180_v24 = vadd.f32 %v330_v18, %v179_v22  ;;  %v388_v25 = vpop.f32.mrb[3].mxu0 }
 0x130   :  { %436 = vpow2.f32 %v340_v23  ;;  %v341_v26 = vmul.f32 -1.442695, %v180_v24 }
 0x132   :  { %438 = vpow2.f32 %v341_v26 }
 0x13a   :  { %v437_v27 = vpop.eup %436 }
 0x13b   :  { %v189_v28 = vadd.f32 1.0, %v437_v27 }
 0x13c   :  { %v439_v29 = vpop.eup %438 }
 0x13d   :  { %440 = vrcp.f32 %v189_v28  ;;  %v190_v30 = vadd.f32 1.0, %v439_v29 }
 0x13f   :  { %442 = vrcp.f32 %v190_v30 }
 0x147   :  { %v441_v31 = vpop.eup %440 }
 0x148   :  { %v195_v33 = vmul.f32 %v441_v31, %v177_v20 }
 0x149   :  { %v443_v32 = vpop.eup %442 }
 0x14a   :  { %v196_v34 = vmul.f32 %v443_v32, %v180_v24 }
 0x14c   :  { %v197_v35 = vpack.c.bf16 %v196_v34, %v195_v33 }
 0x14e   :  { %406 = vmatmul.mubr.bf16.vlgmr.msra.gmra.mrb[0].mxu1 %v197_v35 }
 0x221   :  { %v303_v37 = vpop.f32.mrb[0].mxu1 }
 0x222   :  { %v304_v38 = vadd.f32 %v342_v36, %v303_v37  ;;  %v407_v39 = vpop.f32.mrb[1].mxu1 }
 0x223   :  { %v306_v40 = vpop.f32.mrb[2].mxu1 }
 0x224   :  { %310 = vst [vmem:[#allocation8] sm:$0xff] %v304_v38  ;;  %v307_v41 = vadd.f32 %v342_v36, %v306_v40  ;;  %v408_v42 = vpop.f32.mrb[3].mxu1 }
 0x226   :  { %311 = vst [vmem:[#allocation8 + $0x8] sm:$0xff] %v307_v41 }
 0x227   :  { %521 = shalt.err (!%p518_p0)
}
 0x228   :  { %s522_s10 = scalar_lea.hbm %s653_s5, 256 }
 0x229   :  { %p523_p1 = scmp.ne.s32.totalorder %s653_s5, %s522_s10  ;;  %p526_p2 = scmp.lt.u32.totalorder %s522_s10, %s653_s5 }
 0x22b   :  { %p528_p3 = pnand %p526_p2, %p523_p1 }
 0x22d   :  { %531 = shalt.err (!%p528_p3)
}
 0x22e   :  { %s546_s15 = smov 128   ;;  %s547_s16 = smov 8  }
 0x22f   :  { %323 = dma.vmem_to_hbm [thread:$0]  %s318_s7, 256, %s653_s5, [#allocation4], %s546_s15, %s546_s15, %s547_s16  }
 0x230   :  { %536 = dma.done.wait [#allocation4], 256  }
 0x231   :  { %537 = vsyncadd [#allocation4], 4294967040 }
 0x232   :  { %327 = vsyncpa [#allocation3], 1 }
 0x233   :  { %328 = vsyncpa [#allocation6], 1 }
 0x234   :  { %329 = vsyncpa [#allocation4], 1 }

</bundles_post_ra>
